<compile_context>
chip_gen: v7x
topology: tpu7x:2x2x1
jax: 0.10.0
libtpu: 0.0.40
codegen_flags: <defaults>
</compile_context>

<pallas_src>
import functools
import math

import jax
import jax.numpy as jnp
from jax.experimental import pallas as pl
from jax.experimental.pallas import tpu as pltpu

# Module hyper-parameters (defaults from MagFace.__init__)
S_SCALE = 64.0
EPS = 0.001
L_MARGIN = 0.45
U_MARGIN = 0.8
L_A = 10.0
U_A = 110.0

_COS_PI_MINUS_EPS = math.cos(math.pi - EPS)


def _magface_kernel(emb_ref, k_ref, inv_norm_ref, margin_ref, label_ref,
                    out_ref):
    # (B, tC) cosine: matmul in the streamed weight dtype, f32 accumulation,
    # post-scaled by the precomputed per-column inverse norm.
    cos = jnp.dot(emb_ref[...], k_ref[...],
                  preferred_element_type=jnp.float32)
    cos = cos * inv_norm_ref[...]
    cos = jnp.clip(cos, -1.0 + EPS, 1.0 - EPS)                   # (B, tC)

    # One-hot of the label inside this class tile.  Per perf review, the tile
    # offset is subtracted from the (B, 1) label instead of added to the
    # full-tile iota.
    tc = out_ref.shape[1]
    rel_label = label_ref[...] - pl.program_id(0) * tc           # (B, 1)
    col = jax.lax.broadcasted_iota(jnp.int32, out_ref.shape, 1)  # (B, tC)
    is_label = col == rel_label                                  # (B, tC)

    # Gather the per-row label-column cosine with one masked cross-lane
    # reduce (at most one True per row; rows whose label is in another tile
    # yield 0 and their fixup value is never selected below).
    cos_lab = jnp.sum(jnp.where(is_label, cos, 0.0),
                      axis=1, keepdims=True)                     # (B, 1)

    # Per-row margin trig on (B, 1) only:
    #   cos(theta + m) = c*cos(m) - sqrt(1 - c^2)*sin(m),  theta = acos(c)
    #   clip high: theta + m >= pi - eps  <=>  c <= cos(pi - eps - m)
    # (low clip theta + m <= eps is impossible: m >= 0.415 > eps)
    m = margin_ref[...]                                          # (B, 1)
    sin_theta = jnp.sqrt(jnp.maximum(1.0 - cos_lab * cos_lab, 0.0))
    cos_tm = cos_lab * jnp.cos(m) - sin_theta * jnp.sin(m)
    cos_tm = jnp.where(cos_lab <= jnp.cos(math.pi - EPS - m),
                       _COS_PI_MINUS_EPS, cos_tm)                # (B, 1)

    # Non-label entries: theta already lies inside (eps, pi-eps) after the
    # cosine clamp, so the clipped cosine passes through unchanged.
    out_ref[...] = jnp.where(is_label, cos_tm, cos) * S_SCALE


def _vmem_capacity_bytes():
    try:
        info = pltpu.get_tpu_info()
        cap = getattr(info, "vmem_capacity_bytes", None)
        if cap:
            return int(cap)
    except Exception:
        pass
    return 64 << 20   # conservative fallback (v7x per-TC VMEM)


def _pick_tile_c(C, vmem_cap_bytes):
    """Generation-aware class-tile: big tiles on 128-MiB-VMEM parts, and keep
    the grid >= 2 steps so v7x megacore has work for both TensorCores."""
    target = 2048 if vmem_cap_bytes >= (96 << 20) else 1024
    best = None
    for t in (2048, 1024, 512, 256, 128):
        if t <= target and C % t == 0:
            if best is None:
                best = t
            if C // t >= 2:
                return t
    return best if best is not None else C


@functools.partial(jax.jit,
                   static_argnames=("tile_c", "weight_dtype", "vmem_cap"))
def _magface_forward_impl(embeddings, norms, label, kernel, *,
                          tile_c, weight_dtype, vmem_cap):
    B, E = embeddings.shape
    C = kernel.shape[1]

    # Cast the dominant HBM streams once outside the grid; keep normalization
    # and the matmul accumulator in f32.
    kq = kernel.astype(weight_dtype)
    embq = embeddings.astype(weight_dtype)
    k32 = kq.astype(jnp.float32)
    inv_norm = jax.lax.rsqrt(
        jnp.sum(k32 * k32, axis=0, keepdims=True) + 1e-12)       # (1, C) f32

    # Adaptive margin (cheap (B,1) glue, computed once outside the grid).
    ada_margin = ((U_MARGIN - L_MARGIN) / (U_A - L_A)
                  * (norms.astype(jnp.float32) - L_A) + L_MARGIN)  # (B, 1)
    label2d = label.reshape(B, 1).astype(jnp.int32)

    itemsize = jnp.dtype(weight_dtype).itemsize
    vmem_est = (B * E * itemsize                     # embeddings (fetched once)
                + 2 * E * tile_c * itemsize          # weight tile (double buf)
                + 2 * tile_c * 4                     # inv_norm tile
                + 2 * B * tile_c * 4                 # output tile (double buf)
                + 8 * B * 4)                         # margin + label
    vmem_limit = int(min(max(2 * vmem_est, 32 << 20),
                         int(vmem_cap * 0.8)))

    grid = (C // tile_c,)
    out = pl.pallas_call(
        _magface_kernel,
        out_shape=jax.ShapeDtypeStruct((B, C), jnp.float32),
        grid_spec=pltpu.PrefetchScalarGridSpec(
            num_scalar_prefetch=0,
            grid=grid,
            in_specs=[
                pl.BlockSpec((B, E), lambda j: (0, 0)),          # embeddings
                pl.BlockSpec((E, tile_c), lambda j: (0, j)),     # class kernel
                pl.BlockSpec((1, tile_c), lambda j: (0, j)),     # 1/||w_c||
                pl.BlockSpec((B, 1), lambda j: (0, 0)),          # ada_margin
                pl.BlockSpec((B, 1), lambda j: (0, 0)),          # label
            ],
            out_specs=pl.BlockSpec((B, tile_c), lambda j: (0, j)),
        ),
        compiler_params=pltpu.CompilerParams(
            dimension_semantics=("parallel",),
            vmem_limit_bytes=vmem_limit),
    )(embq, kq, inv_norm, ada_margin, label2d)
    return out


def magface_forward(embeddings, norms, label, kernel, *, tile_c=None,
                    weight_dtype=None):
    """Returns scaled_cosine_m of shape (B, classnum)."""
    C = kernel.shape[1]
    if weight_dtype is None:
        weight_dtype = kernel.dtype
    vmem_cap = _vmem_capacity_bytes()
    if tile_c is None:
        tile_c = _pick_tile_c(C, vmem_cap)
    tile_c = min(tile_c, C)
    assert C % tile_c == 0, "classnum must be a multiple of tile_c"
    assert tile_c % 128 == 0, "tile_c must be lane-aligned (multiple of 128)"
    return _magface_forward_impl(embeddings, norms, label, kernel,
                                 tile_c=int(tile_c),
                                 weight_dtype=jnp.dtype(weight_dtype),
                                 vmem_cap=int(vmem_cap))


def init_class_kernel(key, embedding_size, classnum):
    # Mimic: uniform_(-1, 1).renorm_(2, 1, 1e-5).mul_(1e5)
    w = jax.random.uniform(key, (embedding_size, classnum),
                           minval=-1.0, maxval=1.0, dtype=jnp.float32)
    col_norm = jnp.sqrt(jnp.sum(w * w, axis=0, keepdims=True))
    scale = jnp.minimum(1.0, 1e-5 / col_norm)
    return w * scale * 1e5


def l2_norm_rows(x):
    return x / jnp.sqrt(jnp.sum(x * x, axis=1, keepdims=True))


def magface_reference(embeddings, norms, label, kernel):
    """Pure-JAX transcription of MagFace.forward for validation."""
    kn = kernel / jnp.sqrt(jnp.sum(kernel * kernel, axis=0, keepdims=True))
    cosine = jnp.clip(embeddings @ kn, -1.0 + EPS, 1.0 - EPS)
    onehot = jax.nn.one_hot(label, kernel.shape[1], dtype=cosine.dtype)
    ada_margin = ((U_MARGIN - L_MARGIN) / (U_A - L_A) * (norms - L_A)
                  + L_MARGIN)
    m_arc = onehot * ada_margin
    theta = jnp.arccos(cosine)
    theta_m = jnp.clip(theta + m_arc, EPS, math.pi - EPS)
    return jnp.cos(theta_m) * S_SCALE


if __name__ == "__main__":
    # Small, deterministic example shapes (embedding_size=32, classnum=256,
    # batch=8) — classnum tiled into at least 2 lane-dense grid steps.
    B, E, C = 8, 32, 256
    key = jax.random.PRNGKey(0)
    k_key, e_key, n_key, l_key = jax.random.split(key, 4)

    kernel = init_class_kernel(k_key, E, C)
    embeddings = l2_norm_rows(
        jax.random.normal(e_key, (B, E), dtype=jnp.float32))
    norms = jax.random.uniform(n_key, (B, 1), minval=1.0, maxval=50.0,
                               dtype=jnp.float32)
    label = jax.random.randint(l_key, (B,), 0, C, dtype=jnp.int32)

    # --- f32 weight path (bit-faithful to the PyTorch reference) ---
    out_f32 = magface_forward(embeddings, norms, label, kernel)
    jax.block_until_ready(out_f32)
    assert out_f32.shape == (B, C)
    ref = magface_reference(embeddings, norms, label, kernel)
    assert jnp.allclose(out_f32, ref, atol=1e-2, rtol=1e-4), (
        float(jnp.max(jnp.abs(out_f32 - ref))))

    # --- bf16 weight/embedding path (halves the dominant HBM stream);
    #     validated against the reference evaluated on the same quantized
    #     operands.
    out_bf16 = magface_forward(embeddings, norms, label, kernel,
                               weight_dtype=jnp.bfloat16)
    jax.block_until_ready(out_bf16)
    emb_q = embeddings.astype(jnp.bfloat16).astype(jnp.float32)
    ker_q = kernel.astype(jnp.bfloat16).astype(jnp.float32)
    ref_q = magface_reference(emb_q, norms, label, ker_q)
    assert jnp.allclose(out_bf16, ref_q, atol=5e-2, rtol=1e-3), (
        float(jnp.max(jnp.abs(out_bf16 - ref_q))))

    print("KERNEL_OK")
</pallas_src>

<mosaic_0001>
module attributes {stable_mosaic.version = 11 : i64} {
  func.func @_magface_kernel(%arg0: i32, %arg1: memref<8x32xf32, #tpu.memory_space<vmem>>, %arg2: memref<32x128xf32, #tpu.memory_space<vmem>>, %arg3: memref<1x128xf32, #tpu.memory_space<vmem>>, %arg4: memref<8x1xf32, #tpu.memory_space<vmem>>, %arg5: memref<8x1xi32, #tpu.memory_space<vmem>>, %arg6: memref<8x128xf32, #tpu.memory_space<vmem>>) attributes {dimension_semantics = [#tpu.dimension_semantics<parallel>], iteration_bounds = array<i64: 2>, scalar_prefetch = 0 : i64, scratch_operands = 0 : i64, tpu.core_type = #tpu.core_type<tc>, window_params = [{pipeline_mode = #tpu.pipeline_mode<synchronous>, transform_indices = @transform_0, window_bounds = array<i64: 8, 32>}, {transform_indices = @transform_1, window_bounds = array<i64: 32, 128>}, {transform_indices = @transform_2, window_bounds = array<i64: 1, 128>}, {pipeline_mode = #tpu.pipeline_mode<synchronous>, transform_indices = @transform_3, window_bounds = array<i64: 8, 1>}, {pipeline_mode = #tpu.pipeline_mode<synchronous>, transform_indices = @transform_4, window_bounds = array<i64: 8, 1>}, {transform_indices = @transform_5, window_bounds = array<i64: 8, 128>}]} {
    %c0 = arith.constant 0 : index
    %c0_0 = arith.constant 0 : index
    %0 = vector.load %arg1[%c0, %c0_0] : memref<8x32xf32, #tpu.memory_space<vmem>>, vector<8x32xf32>
    %c0_1 = arith.constant 0 : index
    %c0_2 = arith.constant 0 : index
    %1 = vector.load %arg2[%c0_1, %c0_2] : memref<32x128xf32, #tpu.memory_space<vmem>>, vector<32x128xf32>
    %cst = arith.constant dense<0.000000e+00> : vector<8x128xf32>
    %2 = tpu.matmul %0, %1, %cst {dimension_numbers = #tpu.dot_dimension_numbers<[1], [0], [0], [1], [0, 0, 1, 1], [], []>} : vector<8x32xf32>, vector<32x128xf32>, vector<8x128xf32> -> vector<8x128xf32>
    %c0_3 = arith.constant 0 : index
    %c0_4 = arith.constant 0 : index
    %3 = vector.load %arg3[%c0_3, %c0_4] : memref<1x128xf32, #tpu.memory_space<vmem>>, vector<1x128xf32>
    %4 = vector.broadcast %3 : vector<1x128xf32> to vector<8x128xf32>
    %5 = arith.mulf %2, %4 : vector<8x128xf32>
    %cst_5 = arith.constant -9.990000e-01 : f32
    %cst_6 = arith.constant 9.990000e-01 : f32
    %6 = vector.broadcast %cst_5 : f32 to vector<8x128xf32>
    %7 = arith.maximumf %6, %5 : vector<8x128xf32>
    %8 = vector.broadcast %cst_6 : f32 to vector<8x128xf32>
    %9 = arith.minimumf %8, %7 : vector<8x128xf32>
    %c0_7 = arith.constant 0 : index
    %c0_8 = arith.constant 0 : index
    %10 = vector.load %arg5[%c0_7, %c0_8] : memref<8x1xi32, #tpu.memory_space<vmem>>, vector<8x1xi32>
    %c128_i32 = arith.constant 128 : i32
    %11 = arith.muli %arg0, %c128_i32 : i32
    %12 = vector.broadcast %11 : i32 to vector<8x1xi32>
    %13 = arith.subi %10, %12 : vector<8x1xi32>
    %14 = tpu.iota {dimensions = array<i32: 1>} : vector<8x128xi32>
    %15 = vector.broadcast %13 : vector<8x1xi32> to vector<8x128xi32>
    %16 = arith.cmpi eq, %14, %15 : vector<8x128xi32>
    %cst_9 = arith.constant 0.000000e+00 : f32
    %17 = vector.broadcast %cst_9 : f32 to vector<8x128xf32>
    %18 = arith.select %16, %9, %17 : vector<8x128xi1>, vector<8x128xf32>
    %cst_10 = arith.constant dense<0.000000e+00> : vector<8xf32>
    %19 = vector.multi_reduction <add>, %18, %cst_10 [1] : vector<8x128xf32> to vector<8xf32>
    %20 = vector.shape_cast %19 : vector<8xf32> to vector<8x1xf32>
    %c0_11 = arith.constant 0 : index
    %c0_12 = arith.constant 0 : index
    %21 = vector.load %arg4[%c0_11, %c0_12] : memref<8x1xf32, #tpu.memory_space<vmem>>, vector<8x1xf32>
    %22 = arith.mulf %20, %20 : vector<8x1xf32>
    %cst_13 = arith.constant 1.000000e+00 : f32
    %23 = vector.broadcast %cst_13 : f32 to vector<8x1xf32>
    %24 = arith.subf %23, %22 : vector<8x1xf32>
    %cst_14 = arith.constant 0.000000e+00 : f32
    %25 = vector.broadcast %cst_14 : f32 to vector<8x1xf32>
    %26 = arith.maximumf %24, %25 : vector<8x1xf32>
    %27 = math.sqrt %26 : vector<8x1xf32>
    %28 = math.cos %21 : vector<8x1xf32>
    %29 = arith.mulf %20, %28 : vector<8x1xf32>
    %30 = math.sin %21 : vector<8x1xf32>
    %31 = arith.mulf %27, %30 : vector<8x1xf32>
    %32 = arith.subf %29, %31 : vector<8x1xf32>
    %cst_15 = arith.constant 3.14059258 : f32
    %33 = vector.broadcast %cst_15 : f32 to vector<8x1xf32>
    %34 = arith.subf %33, %21 : vector<8x1xf32>
    %35 = math.cos %34 : vector<8x1xf32>
    %36 = arith.cmpf ole, %20, %35 : vector<8x1xf32>
    %cst_16 = arith.constant -0.999999523 : f32
    %37 = vector.broadcast %cst_16 : f32 to vector<8x1xf32>
    %38 = arith.select %36, %37, %32 : vector<8x1xi1>, vector<8x1xf32>
    %39 = vector.shape_cast %38 : vector<8x1xf32> to vector<8x1xf32>
    %40 = vector.broadcast %39 : vector<8x1xf32> to vector<8x128xf32>
    %41 = arith.select %16, %40, %9 : vector<8x128xi1>, vector<8x128xf32>
    %cst_17 = arith.constant 6.400000e+01 : f32
    %42 = vector.broadcast %cst_17 : f32 to vector<8x128xf32>
    %43 = arith.mulf %41, %42 : vector<8x128xf32>
    %c0_18 = arith.constant 0 : index
    %c0_19 = arith.constant 0 : index
    %44 = vector.load %arg6[%c0_18, %c0_19] : memref<8x128xf32, #tpu.memory_space<vmem>>, vector<8x128xf32>
    tpu.vector_store %arg6[%c0_18, %c0_19], %43 {strides = array<i32>} : memref<8x128xf32, #tpu.memory_space<vmem>>, vector<8x128xf32>,
    return
  }
  func.func @transform_0(%arg0: i32) -> (i32, i32) {
    %c0_i32 = arith.constant 0 : i32
    %c0_i32_0 = arith.constant 0 : i32
    %c0_i32_1 = arith.constant 0 : i32
    return %c0_i32, %c0_i32_0 : i32, i32
  }
  func.func @transform_1(%arg0: i32) -> (i32, i32) {
    %c0_i32 = arith.constant 0 : i32
    %c0_i32_0 = arith.constant 0 : i32
    return %c0_i32, %arg0 : i32, i32
  }
  func.func @transform_2(%arg0: i32) -> (i32, i32) {
    %c0_i32 = arith.constant 0 : i32
    %c0_i32_0 = arith.constant 0 : i32
    return %c0_i32, %arg0 : i32, i32
  }
  func.func @transform_3(%arg0: i32) -> (i32, i32) {
    %c0_i32 = arith.constant 0 : i32
    %c0_i32_0 = arith.constant 0 : i32
    %c0_i32_1 = arith.constant 0 : i32
    return %c0_i32, %c0_i32_0 : i32, i32
  }
  func.func @transform_4(%arg0: i32) -> (i32, i32) {
    %c0_i32 = arith.constant 0 : i32
    %c0_i32_0 = arith.constant 0 : i32
    %c0_i32_1 = arith.constant 0 : i32
    return %c0_i32, %c0_i32_0 : i32, i32
  }
  func.func @transform_5(%arg0: i32) -> (i32, i32) {
    %c0_i32 = arith.constant 0 : i32
    %c0_i32_0 = arith.constant 0 : i32
    return %c0_i32, %arg0 : i32, i32
  }
}

</mosaic_0001>

<bundles_post_ra>
// kernel: _magface_forward_impl.1
= control target key start
LH: loop header
LB: loop body
LE: loop exit
PB: predicated region body
PF: predicated region fallthrough
CT: control target
= control target key end

     0   :  { %10 = vsyncpa [#allocation4], 0  ;;  %s1319_s0 = inlined_call_operand.vmem [shape: f32[8,32], index: 0, kind: input, shape index: {}]   ;;  %s1320_s1 = inlined_call_operand.vmem [shape: f32[32,256], index: 1, kind: input, shape index: {}]   ;;  %s1321_s2 = inlined_call_operand.vmem [shape: f32[1,256], index: 2, kind: input, shape index: {}]   ;;  %s1322_s3 = inlined_call_operand.vmem [shape: f32[8,1], index: 3, kind: input, shape index: {}]   ;;  %s1323_s4 = inlined_call_operand.vmem [shape: s32[8,1], index: 4, kind: input, shape index: {}]   ;;  %s1324_s5 = inlined_call_operand.hbm [shape: f32[8,256], index: 5, kind: output, shape index: {}]  }
   0x1   :  { %12 = vsyncpa [#allocation4 + $0x1], 0  ;;  %s1032_s18 = smov 0   ;;  %s1034_s19 = smov 0  }
   0x2   :  { %s1036_s20 = smov 0   ;;  %s1038_s21 = smov 0  }
   0x3 LB: > { %s1053_s22 = sadd.s32 4294967295, %s989_s21   ;;  %s808_s23 = sadd.s32 4294967294, %s989_s21   ;;  %s989_s21 = sphi %s1038_s21, %s1332_s21   ;;  %s985_s20 = sphi %s1036_s20, %s1331_s20   ;;  %s981_s19 = sphi %s1034_s19, %s1330_s19   ;;  %s977_s18 = sphi %s1032_s18, %s1329_s18  }
   0x4   : > { %s1057_s24 = sadd.s32 1, %s989_s21   ;;  %s46_s25 = sadd.s32 1, %s985_s20 }
   0x5   : > { %s43_s26 = ssub.s32 %s989_s21, %s1057_s24  ;;  %p53_p0 = scmp.ne.s32.totalorder %s985_s20, %s981_s19 }
   0x6   : > { %p44_p1 = scmp.eq.s32.totalorder %s43_s26, 0  ;;  %p54_p2 = scmp.eq.s32.totalorder %s989_s21, 0 }
   0x7   : > { %p151_p3 = scmp.eq.s32.totalorder %s1053_s22, 1  ;;  %p156_p4 = scmp.ne.s32.totalorder %s981_s19, %s977_s18 }
   0x8   : > { %s1069_s27 = scalar_select %p44_p1, %s985_s20, %s46_s25  }
   0x9   : > { %p55_p5 = por %p54_p2, %p53_p0  ;;  %p1071_p6 = por %p151_p3, %p53_p0 }
   0xa   : > { %p157_p7 = scmp.eq.s32.totalorder %s808_s23, 1  ;;  %p810_p9 = scmp.ge.s32.totalorder %s989_s21, 2 }
   0xc   : > { %p1075_p8 = por %p157_p7, %p156_p4  ;;  %182 = sbr.rel (%p810_p9) target bundleno = 26 (0x1a), region = 28 }
  0x13   : > { %185 = sbr.rel (!%p55_p5) target bundleno = 26 (0x1a), region = 32  ;;  %s187_s30 = sand.u32 (%p55_p5), 1, %s985_s20  }
  0x14   : > { %s812_s6 = sshll.u32 (%p55_p5), %s989_s21, 3  ;;  %s811_s7 = sshll.u32 (%p55_p5), %s187_s30, 5 }
  0x15   : > { %s191_s10 = scalar_lea.vmem (%p55_p5), %s1320_s1, %s812_s6  ;;  %s189_s11 = scalar_lea.vmem (%p55_p5), [#allocation2], %s811_s7 }
  0x16   : > { %v225_v0 = vld [vmem:[%s191_s10] sm:$0xff] (%p55_p5)  ;;  %v227_v1 = vld [vmem:[%s191_s10 + $0x10] sm:$0xff] (%p55_p5) }
  0x17   : > { %v229_v2 = vld [vmem:[%s191_s10 + $0x20] sm:$0xff] (%p55_p5)  ;;  %226 = vst [vmem:[%s189_s11] sm:$0xff] (%p55_p5), %v225_v0  ;;  %228 = vst [vmem:[%s189_s11 + $0x8] sm:$0xff] (%p55_p5), %v227_v1  ;;  %v231_v3 = vld [vmem:[%s191_s10 + $0x30] sm:$0xff] (%p55_p5) }
  0x18   : > { %230 = vst [vmem:[%s189_s11 + $0x10] sm:$0xff] (%p55_p5), %v229_v2  ;;  %232 = vst [vmem:[%s189_s11 + $0x18] sm:$0xff] (%p55_p5), %v231_v3 }
  0x1a PF: > { %p813_p10 = scmp.ge.s32.totalorder %s989_s21, 1  ;;  %p243_p11 = scmp.lt.s32.totalorder %s989_s21, 3 }
  0x1c   : > { %p244_p12 = pnand %p813_p10, %p243_p11 }
  0x1d   : > { %s1090_s12 = sand.u32 (!%p244_p12), 1, %s981_s19   ;;  %v991_v4 = vmov (!%p244_p12), 0.0|0.0   ;;  %vm992_vm0 = vmmov (!%p244_p12), 0   ;;  %v993_v5 = vmov (!%p244_p12), 0.0   ;;  %v372_v6 = vld [vmem:[%s1323_s4] sm:$0xff] (!%p244_p12)  ;;  %s819_s16 = sshll.u32 (!%p244_p12), %s1053_s22, 7  ;;  %v376_v17 = vlaneseq (!%p244_p12) }
  0x1e   : > { %247 = sbr.rel (%p244_p12) target bundleno = 572 (0x23c), region = 74  ;;  %852 = vmatprep.subr.bf16.mxu0 (!%p244_p12), %v991_v4  ;;  %s814_s13 = sshll.u32 (!%p244_p12), %s1090_s12, 5  ;;  %849 = vmatprep.mubr.msk.f32.mxu0 (!%p244_p12), %vm992_vm0, %v993_v5  ;;  %v994_v7 = vmov (!%p244_p12), 0   ;;  %v374_v8 = vstv (!%p244_p12), %s819_s16  ;;  %v283_v16 = vld [vmem:[%s1319_s0] sm:$0xff] (!%p244_p12)  ;;  %vm288_vm1 = vcmask (!%p244_p12), 261120  }
  0x1f   : > { %915 = vset.pattern.permute.xlu0 (!%p244_p12), %v994_v7  ;;  %916 = vset.pattern.permute.xlu1 (!%p244_p12), %v994_v7  ;;  %s252_s17 = scalar_lea.vmem (!%p244_p12), [#allocation2], %s814_s13  ;;  %v375_v12 = vsub.s32 (!%p244_p12), %v372_v6, %v374_v8  ;;  %p280_p13 = scmp.lt.s32.totalorder (!%p244_p12), %s1053_s22, 1  ;;  %v1107_v19 = vand.u32 (!%p244_p12), 127, %v376_v17  ;;  %v1114_v22 = vld [vmem:[%s1322_s3] sm:$0xff] (!%p244_p12)  ;;  %v995_v43 = vmov (!%p244_p12), 683565275  }
  0x20   : > { %v284_v9 = vld [vmem:[%s252_s17] sm:$0xff] (!%p244_p12)  ;;  %v285_v10 = vld [vmem:[%s252_s17 + $0x8] sm:$0xff] (!%p244_p12)  ;;  %v286_v11 = vld [vmem:[%s252_s17 + $0x10] sm:$0xff] (!%p244_p12)  ;;  %v399_v25 = vand.u32 (!%p244_p12), 2139095040, %v1114_v22  ;;  %v1123_v27 = vsub.f32 (!%p244_p12), 3.1405926, %v1114_v22 }
  0x21   : > { %v853_v13 = vpack.c.bf16 (!%p244_p12), %v285_v10, %v284_v9  ;;  %v287_v14 = vld [vmem:[%s252_s17 + $0x18] sm:$0xff] (!%p244_p12)  ;;  %379 = vperm.xlu0 (!%p244_p12), %915, %v375_v12   ;;  %v396_v41 = vand.u32 (!%p244_p12), 2147483647, %v1114_v22  ;;  %v996_v45 = vmov (!%p244_p12), 2475754826   ;;  %s815_s10 = sshll.u32 (!%p244_p12), %s1090_s12, 3  ;;  %s1275_s17 = scalar_lea.hbm (!%p244_p12), %s1324_s5, %s819_s16 }
  0x22   : > { %v856_v15 = vpack.c.bf16 (!%p244_p12), %v287_v14, %v286_v11  ;;  %v400_v29 = vshrl.u32 (!%p244_p12), %v399_v25, 23  ;;  %v610_v30 = vand.u32 (!%p244_p12), 2139095040, %v1123_v27  ;;  %v997_v47 = vmov (!%p244_p12), 2102212464   ;;  %s279_s11 = scalar_lea.vmem (!%p244_p12), [#allocation3], %s815_s10  ;;  %s721_s23 = scalar_lea.sflag (!%p244_p12), [#allocation4], %s1090_s12 }
  0x23   : > { %854 = vmatpush3.bf16.msra.mxu0 (!%p244_p12), %v853_v13  ;;  %v998_v49 = vmov (!%p244_p12), 920167782   ;;  %v999_v52 = vmov (!%p244_p12), 1326507024   ;;  %v1000_v56 = vmov (!%p244_p12), 2131351028  }
  0x24   : > { %855 = vmatprep.subr.bf16.mxu0 (!%p244_p12), %v991_v4  ;;  %v820_v31 = vadd.s32 (!%p244_p12), 4294967169, %v400_v29  ;;  %v611_v32 = vshrl.u32 (!%p244_p12), %v610_v30, 23  ;;  %v403_v60 = vand.u32 (!%p244_p12), 8388607, %v396_v41  ;;  %v607_v2 = vand.u32 (!%p244_p12), 2147483647, %v1123_v27 }
  0x25   : > { %s281_s26 = scalar_select %p280_p13, %s1053_s22, 1 }
  0x26   : > { %v406_v33 = vadd.s32 1, %v820_v31  ;;  %v828_v34 = vadd.s32 4294967169, %v611_v32  ;;  %v404_v14 = vor.u32 8388608, %v403_v60  ;;  %s734_s13 = sshll.u32 %s279_s11, 4  ;;  %s1277_s13 = int_to_ptr.vmem [resolvable:$true] %s734_s13 }
  0x27   : > { %857 = vmatpush3.bf16.msra.mxu0 %v856_v15  ;;  %s282_s7 = scalar_lea.vmem %s1321_s2, %s281_s26  ;;  %s927_s25 = scalar_lea.vmem %s1277_s13, 128 }
  0x28   : > { %v817_v18 = vld [vmem:[%s282_s7] ss:$0 sm:$0xff]  ;;  %vm407_vm3 = vcmp.gt.s32.totalorder %v406_v33, 0  ;;  %v617_v35 = vadd.s32 1, %v828_v34  ;;  %v444_v34 = vshll.u32 %v404_v14, 8  ;;  %p928_p0 = scmp.ne.s32.totalorder %s1277_s13, %s927_s25  ;;  %s1001_s26 = smov [#allocation3]  }
  0x29   : > { %v408_v36 = vsel %vm407_vm3, %v406_v33, 0  ;;  %vm397_vm3 = vcmp.le.f32.partialorder %v396_v41, 0.7853982  ;;  %s931_s30 = sshll.u32 %s1001_s26, 4  ;;  %s932_s30 = int_to_ptr.vmem [resolvable:$false] %s931_s30 }
  0x2a   : > { %850 = vmatmul.mubr.msk.f32.vlgmr.msra.gmra.mrb[0].mxu0 %vm288_vm1, %v283_v16  ;;  %vm618_vm4 = vcmp.gt.s32.totalorder %v617_v35, 0  ;;  %v410_v37 = vand.u32 31, %v408_v36  ;;  %v1134_v42 = vshrl.u32 %v408_v36, 5  ;;  %vm398_vm1 = vcmp.lt.s32.totalorder %v1114_v22, 0  ;;  %p929_p1 = pnand %p928_p0, %p1071_p6  ;;  %s933_s22 = scalar_lea.vmem %s932_s30, 256 }
  0x2b   : > { %v619_v38 = vsel %vm618_vm4, %v617_v35, 0  ;;  %vm609_vm4 = vcmp.lt.s32.totalorder %v1123_v27, 0  ;;  %p934_p3 = scmp.lt.s32.totalorder %s1277_s13, %s932_s30  ;;  %p935_p4 = scmp.lt.s32.totalorder %s933_s22, %s927_s25 }
  0x2c   : > { %v1131_v39 = vsub.s32 32, %v410_v37  ;;  %v621_v40 = vand.u32 31, %v619_v38  ;;  %v413_v44 = vshll.u32 %v995_v43, %v410_v37  ;;  %v422_v48 = vshll.u32 %v997_v47, %v410_v37  ;;  %p930_p2 = pneg %p929_p1 }
  0x2d   : > { %v425_v51 = vshll.u32 %v998_v49, %v410_v37  ;;  %v416_v55 = vshll.u32 %v996_v45, %v410_v37  ;;  %v419_v58 = vshll.u32 %v1000_v56, %v410_v37  ;;  %vm428_vm5 = vcmp.lt.s32.totalorder %v1134_v42, 1  ;;  %p936_p5 = por %p935_p4, %p934_p3 }
  0x2e   : > { %v414_v46 = vshrl.u32 %v996_v45, %v1131_v39  ;;  %v423_v50 = vshrl.u32 %v998_v49, %v1131_v39  ;;  %v426_v53 = vshrl.u32 %v999_v52, %v1131_v39  ;;  %v1140_v54 = vsub.s32 32, %v621_v40 }
  0x2f   : > { %v417_v57 = vshrl.u32 %v1000_v56, %v1131_v39  ;;  %v420_v59 = vshrl.u32 %v997_v47, %v1131_v39  ;;  %vm431_vm6 = vcmp.lt.s32.totalorder %v1134_v42, 4  ;;  %v633_v0 = vshll.u32 %v997_v47, %v621_v40  ;;  %p937_p7 = pnand %p936_p5, %p930_p2 }
  0x30   : > { %v415_v61 = vor.u32 %v414_v46, %v413_v44  ;;  %v424_v62 = vor.u32 %v423_v50, %v422_v48  ;;  %v427_v63 = vor.u32 %v426_v53, %v425_v51  ;;  %v634_v1 = vshrl.u32 %v998_v49, %v1140_v54 }
  0x31   : > { %v1150_v3 = vshrl.u32 %v619_v38, 5  ;;  %v636_v4 = vshll.u32 %v998_v49, %v621_v40  ;;  %v637_v5 = vshrl.u32 %v999_v52, %v1140_v54  ;;  %v418_v6 = vor.u32 %v417_v57, %v416_v55 }
  0x32   : > { %v421_v7 = vor.u32 %v420_v59, %v419_v58  ;;  %v624_v8 = vshll.u32 %v995_v43, %v621_v40  ;;  %v625_v9 = vshrl.u32 %v996_v45, %v1140_v54  ;;  %v627_v10 = vshll.u32 %v996_v45, %v621_v40 }
  0x33   : > { %v628_v11 = vshrl.u32 %v1000_v56, %v1140_v54  ;;  %v630_v12 = vshll.u32 %v1000_v56, %v621_v40  ;;  %v631_v13 = vshrl.u32 %v997_v47, %v1140_v54  ;;  %vm430_vm7 = vcmp.lt.s32.totalorder %v1134_v42, 3 }
  0x34   : > { %v437_v15 = vsel %vm431_vm6, %v424_v62, 920167782  ;;  %v635_v16 = vor.u32 %v634_v1, %v633_v0  ;;  %v441_v17 = vsel %vm431_vm6, %v427_v63, 1326507024  ;;  %vm642_vm8 = vcmp.lt.s32.totalorder %v1150_v3, 4 }
  0x35   : > { %vm429_vm9 = vcmp.lt.s32.totalorder %v1134_v42, 2  ;;  %v440_v25 = vsel %vm428_vm5, %v418_v6, %v421_v7  ;;  %v626_v29 = vor.u32 %v625_v9, %v624_v8  ;;  %v629_v30 = vor.u32 %v628_v11, %v627_v10 }
  0x36   : > { %v632_v31 = vor.u32 %v631_v13, %v630_v12  ;;  %v442_v32 = vsel %vm430_vm7, %v424_v62, %v441_v17  ;;  %vm639_vm10 = vcmp.lt.s32.totalorder %v1150_v3, 1  ;;  %vm641_vm11 = vcmp.lt.s32.totalorder %v1150_v3, 3 }
  0x37   : > { %v648_v33 = vsel %vm642_vm8, %v635_v16, 920167782  ;;  %v443_v38 = vsel %vm429_vm9, %v440_v25, %v442_v32  ;;  %vm640_vm12 = vcmp.lt.s32.totalorder %v1150_v3, 2  ;;  %v647_v40 = vsel %vm639_vm10, %v626_v29, %v629_v30 }
  0x38   : > { %v649_v44 = vsel %vm641_vm11, %v632_v31, %v648_v33  ;;  %v651_v45 = vsel %vm639_vm10, %v629_v30, %v632_v31  ;;  %v412_v47 = vshrl.u32 %v995_v43, %v1131_v39  ;;  %v433_v55 = vsel %vm431_vm6, %v421_v7, 2102212464 }
  0x39   : > { %v1198_v51 = vmul.u32.u64.low %v444_v34, %v443_v38  ;;  %v1199_v52 = vmul.u32.u64.high %v444_v34, %v443_v38, %v1198_v51  ;;  %v650_v53 = vsel %vm640_vm12, %v647_v40, %v649_v44  ;;  %v434_v59 = vsel %vm430_vm7, %v418_v6, %v433_v55 }
  0x3a   : > { %v432_v57 = vsel %vm428_vm5, %v412_v47, %v415_v61  ;;  %v623_v60 = vshrl.u32 %v995_v43, %v1140_v54  ;;  %v644_v0 = vsel %vm642_vm8, %v632_v31, 2102212464 }
  0x3b   : > { %v435_v1 = vsel %vm429_vm9, %v432_v57, %v434_v59 }
  0x3c   : > { %v451_v43 = vmul.u32 %v444_v34, %v435_v1 }
  0xa0   : > { %v1109_v20 = vpop.permute.xlu0 %379 }
  0xa1   : > { %vm381_vm2 = vcmp.eq.s32.totalorder %v1107_v19, %v1109_v20 }
  0xfd   : > { %v358_v21 = vpop.f32.mrb[0].mxu0 }
  0xfe   : > { %v1116_v23 = vmul.f32 %v817_v18, %v358_v21  ;;  %v851_v24 = vpop.f32.mrb[1].mxu0  ;;  %v614_v18 = vand.u32 8388607, %v607_v2  ;;  %v638_v21 = vor.u32 %v637_v5, %v636_v4  ;;  %v643_v4 = vsel %vm639_vm10, %v623_v60, %v626_v29 }
  0xff   : > { %v436_v24 = vsel %vm428_vm5, %v415_v61, %v418_v6  ;;  %v645_v5 = vsel %vm641_vm11, %v629_v30, %v644_v0  ;;  %vm1247_vm5 = vcmp.le.f32.partialorder %v607_v2, 0.7853982 }
 0x100   : > { %v818_v26 = vclamps-f32 %v1116_v23, 0.999  ;;  %v615_v35 = vor.u32 8388608, %v614_v18  ;;  %v652_v36 = vsel %vm642_vm8, %v638_v21, 1326507024  ;;  %v646_v6 = vsel %vm640_vm12, %v643_v4, %v645_v5 }
 0x101   : > { %v653_v46 = vsel %vm641_vm11, %v635_v16, %v652_v36 }
 0x102   : > { %v382_v28 = vsel %vm381_vm2, %v818_v26, 0.0  ;;  %v655_v50 = vshll.u32 %v615_v35, 8  ;;  %v654_v56 = vsel %vm640_vm12, %v651_v45, %v653_v46 }
 0x103   : > { %383 = vadd.xlane.f32.xlu0 %v382_v28  ;;  %v438_v28 = vsel %vm430_vm7, %v421_v7, %v437_v15 }
 0x104   : > { %v439_v37 = vsel %vm429_vm9, %v436_v24, %v438_v28  ;;  %v1209_v39 = vmul.u32.u64.low %v655_v50, %v650_v53  ;;  %v1210_v58 = vmul.u32.u64.high %v655_v50, %v650_v53, %v1209_v39  ;;  %v662_v8 = vmul.u32 %v655_v50, %v646_v6 }
 0x105   : > { %v1195_v48 = vmul.u32.u64.low %v444_v34, %v439_v37  ;;  %v1196_v49 = vmul.u32.u64.high %v444_v34, %v439_v37, %v1195_v48  ;;  %v1216_v62 = vmul.u32.u64.low %v655_v50, %v654_v56  ;;  %v1217_v63 = vmul.u32.u64.high %v655_v50, %v654_v56, %v1216_v62 }
 0x106   : > { %v665_v7 = vadd.s32 1, %v1210_v58 }
 0x107   : > { %v454_v61 = vadd.s32 1, %v1196_v49  ;;  %vm453_vm13 = vc.u32 %v1199_v52, %v1195_v48  ;;  %vm664_vm14 = vc.u32 %v1217_v63, %v1209_v39  ;;  %v452_v35 = vadd.s32 %v1195_v48, %v1199_v52 }
 0x108   : > { %v666_v9 = vsel %vm664_vm14, %v665_v7, %v1210_v58  ;;  %v663_v46 = vadd.s32 %v1209_v39, %v1217_v63  ;;  %vm488_vm14 = vweird.f32 %v1114_v22 }
 0x109   : > { %v455_v54 = vsel %vm453_vm13, %v454_v61, %v1196_v49  ;;  %v667_v11 = vadd.s32 %v666_v9, %v662_v8 }
 0x10a   : > { %v456_v42 = vadd.s32 %v455_v54, %v451_v43 }
 0x10b   : > { %v668_v13 = vadd.s32 536870912, %v667_v11 }
 0x10c   : > { %v457_v10 = vadd.s32 536870912, %v456_v42 }
 0x10d   : > { %v1235_v15 = vshrl.u32 %v668_v13, 30 }
 0x10e   : > { %v458_v12 = vshrl.u32 %v457_v10, 30 }
 0x10f   : > { %v670_v17 = vshll.u32 %v1235_v15, 30  ;;  %v693_v7 = vsub.s32 4, %v1235_v15 }
 0x110   : > { %v459_v14 = vshll.u32 %v458_v12, 30  ;;  %v482_v4 = vsub.s32 4, %v458_v12 }
 0x111   : > { %v671_v18 = vsub.s32 %v667_v11, %v670_v17  ;;  %v694_v10 = vsel %vm609_vm4, %v693_v7, %v1235_v15 }
 0x112   : > { %v460_v16 = vsub.s32 %v456_v42, %v459_v14  ;;  %v483_v54 = vsel %vm398_vm1, %v482_v4, %v458_v12  ;;  %v696_v12 = vsel %vm1247_vm5, 0, %v694_v10 }
 0x113   : > { %v673_v24 = vsub.s32 0, %v671_v18  ;;  %v485_v6 = vsel %vm397_vm3, 0, %v483_v54 }
 0x114   : > { %v462_v3 = vsub.s32 0, %v460_v16  ;;  %v593_v42 = vadd.s32 3, %v485_v6  ;;  %v489_v13 = vand.u32 3, %v485_v6 }
 0x115   : > { %v829_v28 = vmin.u32 %v673_v24, %v671_v18 }
 0x116   : > { %v821_v21 = vmin.u32 %v462_v3, %v460_v16  ;;  %v594_v14 = vand.u32 3, %v593_v42  ;;  %vm494_vm6 = vcmp.eq.s32.totalorder %v489_v13, 2  ;;  %vm491_vm8 = vcmp.eq.s32.totalorder %v489_v13, 0 }
 0x117   : > { %v675_v30 = vclz %v829_v28  ;;  %vm490_vm10 = vcmp.lt.s32.totalorder %v489_v13, 2 }
 0x118   : > { %v464_v25 = vclz %v821_v21  ;;  %vm599_vm7 = vcmp.eq.s32.totalorder %v594_v14, 2  ;;  %vm596_vm9 = vcmp.eq.s32.totalorder %v594_v14, 0  ;;  %vm595_vm11 = vcmp.lt.s32.totalorder %v594_v14, 2 }
 0x119   : > { %v830_v31 = vadd.s32 4294967294, %v675_v30 }
 0x11a   : > { %v822_v29 = vadd.s32 4294967294, %v464_v25  ;;  %v700_v25 = vand.u32 3, %v696_v12 }
 0x11b   : > { %vm831_vm0 = vcmp.lt.s32.totalorder %v830_v31, 0 }
 0x11c   : > { %vm823_vm15 = vcmp.lt.s32.totalorder %v822_v29, 0  ;;  %v678_v34 = vsel %vm831_vm0, 0, %v830_v31  ;;  %vm702_vm12 = vcmp.eq.s32.totalorder %v700_v25, 0  ;;  %vm705_vm13 = vcmp.eq.s32.totalorder %v700_v25, 2 }
 0x11d   : > { %v467_v32 = vsel %vm823_vm15, 0, %v822_v29  ;;  %v683_v38 = vsub.s32 4294967266, %v678_v34  ;;  %v679_v47 = vsub.s32 32, %v678_v34  ;;  %v680_v53 = vshll.u32 %v671_v18, %v678_v34 }
 0x11e   : > { %v472_v33 = vsub.s32 4294967266, %v467_v32  ;;  %v468_v36 = vsub.s32 32, %v467_v32  ;;  %v469_v40 = vshll.u32 %v460_v16, %v467_v32  ;;  %vm701_vm15 = vcmp.lt.s32.totalorder %v700_v25, 2 }
 0x11f   : > { %v684_v49 = vadd.s32 127, %v683_v38  ;;  %v681_v55 = vshrl.u32 %v663_v46, %v679_v47 }
 0x120   : > { %v473_v37 = vadd.s32 127, %v472_v33  ;;  %v470_v44 = vshrl.u32 %v452_v35, %v468_v36 }
 0x121   : > { %v685_v56 = vshll.u32 %v684_v49, 23  ;;  %v682_v59 = vor.u32 %v681_v55, %v680_v53 }
 0x122   : > { %v474_v45 = vshll.u32 %v473_v37, 23  ;;  %v471_v50 = vor.u32 %v470_v44, %v469_v40 }
 0x123   : > { %v686_v60 = vor.u32 4788187, %v685_v56  ;;  %v689_v62 = vcvt.s32.f32 %v682_v59 }
 0x124   : > { %v475_v51 = vor.u32 4788187, %v474_v45  ;;  %v478_v58 = vcvt.s32.f32 %v471_v50 }
 0x125   : > { %v687_v52 = vand.u32 2147483647, %v686_v60 }
 0x126   : > { %v476_v57 = vand.u32 2147483647, %v475_v51 }
 0x127   : > { %v690_v1 = vmul.f32 %v689_v62, %v687_v52 }
 0x128   : > { %v479_v48 = vmul.f32 %v478_v58, %v476_v57 }
 0x129   : > { %v691_v63 = vxor.u32 2147483648, %v690_v1 }
 0x12a   : > { %v480_v0 = vxor.u32 2147483648, %v479_v48 }
 0x12b   : > { %v692_v43 = vsel %vm609_vm4, %v691_v63, %v690_v1 }
 0x12c   : > { %v481_v39 = vsel %vm398_vm1, %v480_v0, %v479_v48  ;;  %v695_v41 = vsel %vm1247_vm5, %v1123_v27, %v692_v43  ;;  %vm699_vm1 = vweird.f32 %v1123_v27 }
 0x12d   : > { %v484_v61 = vsel %vm397_vm3, %v1114_v22, %v481_v39 }
 0x12e   : > { %917 = vcosq.f32 %v484_v61 }
 0x12f   : > { %919 = vsinq.f32 %v484_v61 }
 0x130   : > { %921 = vcosq.f32 %v695_v41 }
 0x131   : > { %923 = vsinq.f32 %v695_v41 }
 0x138   : > { %v918_v11 = vpop.eup %917 }
 0x139   : > { %v920_v16 = vpop.eup %919  ;;  %v495_v3 = vxor.u32 2147483648, %v918_v11 }
 0x13a   : > { %v922_v18 = vpop.eup %921  ;;  %v492_v21 = vxor.u32 2147483648, %v920_v16 }
 0x13b   : > { %v924_v24 = vpop.eup %923  ;;  %v496_v15 = vsel %vm494_vm6, %v495_v3, %v920_v16  ;;  %v601_v28 = vsel %vm599_vm7, %v495_v3, %v920_v16  ;;  %v706_v32 = vxor.u32 2147483648, %v922_v18 }
 0x13c   : > { %v493_v29 = vsel %vm491_vm8, %v918_v11, %v492_v21  ;;  %v598_v30 = vsel %vm596_vm9, %v918_v11, %v492_v21  ;;  %v703_v31 = vxor.u32 2147483648, %v924_v24 }
 0x13d   : > { %v497_v33 = vsel %vm490_vm10, %v493_v29, %v496_v15  ;;  %v602_v34 = vsel %vm595_vm11, %v598_v30, %v601_v28  ;;  %v707_v36 = vsel %vm705_vm13, %v706_v32, %v924_v24 }
 0x13e   : > { %v704_v35 = vsel %vm702_vm12, %v922_v18, %v703_v31  ;;  %v498_v38 = vsel %vm488_vm14, nan, %v497_v33  ;;  %v603_v40 = vsel %vm488_vm14, nan, %v602_v34 }
 0x13f   : > { %v708_v46 = vsel %vm701_vm15, %v704_v35, %v707_v36 }
 0x140   : > { %v709_v51 = vsel %vm699_vm1, nan, %v708_v46 }
 0x190   : > { %v384_v2 = vpop.xlane.xlu0 %383 }
 0x191   : > { %v386_v8 = vmul.f32 %v384_v2, %v384_v2  ;;  %v499_v22 = vmul.f32 %v498_v38, %v384_v2  ;;  %vm710_vm4 = vcmp.le.f32.partialorder %v384_v2, %v709_v51 }
 0x193   : > { %v387_v9 = vsub.f32 1.0, %v386_v8 }
 0x195   : > { %v388_v17 = vmax.f32 %v387_v9, 0.0 }
 0x197   : > { %925 = vrsqrt.f32 %v388_v17  ;;  %vm391_vm0 = vcmp.eq.f32.partialorder %v388_v17, inf  ;;  %v394_v45 = vand.u32 2147483648, %v388_v17  ;;  %vm393_vm3 = vcmp.eq.f32.partialorder %v388_v17, 0.0 }
 0x1a1   : > { %v926_v37 = vpop.eup %925 }
 0x1a2   : > { %v390_v44 = vmul.f32 %v926_v37, %v388_v17 }
 0x1a4   : > { %v392_v47 = vsel %vm391_vm0, %v388_v17, %v390_v44 }
 0x1a5   : > { %v395_v49 = vsel %vm393_vm3, %v394_v45, %v392_v47 }
 0x1a6   : > { %v604_v50 = vmul.f32 %v603_v40, %v395_v49 }
 0x1a8   : > { %v605_v53 = vsub.f32 %v499_v22, %v604_v50 }
 0x1aa   : > { %v711_v55 = vsel %vm710_vm4, -0.9999995, %v605_v53 }
 0x1ab   : > { %714 = vperm.xlu1 %916, %v711_v55  }
 0x22a   : > { %v715_v56 = vpop.permute.xlu1 %714 }
 0x22b   : > { %v717_v27 = vsel %vm381_vm2, %v715_v56, %v818_v26 }
 0x22c   : > { %v718_v57 = vmul.f32 64.0, %v717_v27 }
 0x22e   : > { %719 = vst [vmem:[%s279_s11] sm:$0xff] %v718_v57 }
 0x22f   : > { %940 = shalt.err (!%p937_p7)
}
 0x230   : > { %s941_s12 = scalar_lea.hbm %s1275_s17, 128  ;;  %s945_s7 = scalar_lea.hbm %s1324_s5, 256 }
 0x231   : > { %p942_p10 = scmp.ne.s32.totalorder %s1275_s17, %s941_s12  ;;  %p946_p13 = scmp.lt.u32.totalorder %s1275_s17, %s1324_s5 }
 0x232   : > { %p947_p0 = scmp.lt.u32.totalorder %s945_s7, %s941_s12  ;;  %p949_p2 = scmp.lt.u32.totalorder %s941_s12, %s1275_s17 }
 0x233   : > { %p943_p11 = pnand %p942_p10, %p1071_p6 }
 0x234   : > { %p948_p1 = por %p947_p0, %p946_p13 }
 0x235   : > { %p944_p12 = pneg %p943_p11 }
 0x236   : > { %p950_p3 = por %p949_p2, %p948_p1 }
 0x238   : > { %p951_p4 = pnand %p950_p3, %p944_p12 }
 0x23a   : > { %954 = shalt.err (!%p951_p4)
}
 0x23b   : > { %866 = dma.vmem_to_hbm [thread:$0]  (%p1071_p6), %s1277_s13, 128, %s1275_s17, %s721_s23  }
 0x23c PF: > { %s746_s10 = sand.u32 1, %s977_s18   ;;  %p869_p5 = pnand %p810_p9, %p1075_p8 }
 0x23d   : > { %s747_s11 = scalar_lea.sflag [#allocation4], %s746_s10 }
 0x23e   : > { %972 = dma.done.wait (!%p869_p5), %s747_s11, 128  }
 0x23f   : > { %974 = vsyncadd (!%p869_p5), %s747_s11, 4294967168  ;;  %p15_p7 = scmp.ge.s32.totalorder %s1057_s24, 4   ;;  %s1329_s18 = smov %s981_s19 }
 0x240   : > { %s1330_s19 = smov %s985_s20  ;;  %s1331_s20 = smov %s1069_s27 }
 0x241   : > { %s1332_s21 = smov %s1057_s24  ;;  %17 = sbr.rel (!%p15_p7) target bundleno = 3 (0x3), region = 121 }
 0x248   :  { %752 = vsyncpa [#allocation4], 1 }
 0x249   :  { %754 = vsyncpa [#allocation4 + $0x1], 1 }

</bundles_post_ra>
